<compile_context>
chip_gen: v5e
topology: v5e:2x2
jax: 0.10.0
libtpu: 0.0.40
codegen_flags: <defaults>
</compile_context>

<pallas_src>
import functools

import jax
import jax.numpy as jnp
from jax import lax
from jax.experimental import pallas as pl
from jax.experimental.pallas import tpu as pltpu


# ------------------------------- Pallas kernels ------------------------------- #

def _conv_stats_kernel(w_ref, p_ref, conv_ref, sum_ref, sq_ref):
    """Per (parity, M-tile): conv-transpose tile + per-parity partial sum / sum-of-squares."""
    @pl.when(pl.program_id(1) == 0)
    def _():
        sum_ref[...] = jnp.zeros_like(sum_ref)
        sq_ref[...] = jnp.zeros_like(sq_ref)

    # (C_out, K_sub) x (K_sub, tm) -> (C_out, tm); M on the lane axis, f32 accumulation.
    acc = jnp.dot(w_ref[0], p_ref[0], preferred_element_type=jnp.float32)
    conv_ref[0] = acc.astype(conv_ref.dtype)                 # bf16 intermediate store
    sum_ref[0] += jnp.sum(acc, axis=-1, keepdims=True)       # stats from f32 accumulator
    sq_ref[0] += jnp.sum(acc * acc, axis=-1, keepdims=True)


def _bn_lrelu_kernel(conv_ref, scale_ref, shift_ref, o_ref, *, slope):
    """Per (parity, M-tile): BatchNorm affine (precomputed scale/shift) + LeakyReLU."""
    y = conv_ref[0].astype(jnp.float32) * scale_ref[...] + shift_ref[...]
    o_ref[0] = jnp.where(y >= 0, y, slope * y)


# --------------------------------- wrapper glue -------------------------------- #

def _parity_taps(k, stride, padding):
    """For each output residue r (mod stride): [(kernel_idx, input_offset d)] with
    out[stride*a + r] += x[a + d] * w[kernel_idx]."""
    taps = []
    for r in range(stride):
        tr = []
        for kk in range(k):
            if (r + padding - kk) % stride == 0:
                tr.append((kk, (r + padding - kk) // stride))
        taps.append(tr)
    return taps


def _pick_tile(m, max_tile=2048):
    for t in (2048, 1024, 512, 256, 128):
        if t <= max_tile and t <= m and m % t == 0:
            return t
    return m


def deconv_block(x, weight, bias, gamma, beta, *, stride=2, padding=1, slope=0.2, eps=1e-5):
    """x: (N, C_in, H, W); weight: (C_in, C_out, kH, kW) [PyTorch ConvTranspose2d layout].

    `bias` is accepted for interface parity but is a mathematical no-op: a per-channel
    constant added before batch-statistics BatchNorm is removed by the mean subtraction.
    """
    del bias
    N, C_in, H, W = x.shape
    C_in_w, C_out, kH, kW = weight.shape
    assert C_in == C_in_w
    H_out = (H - 1) * stride - 2 * padding + kH
    W_out = (W - 1) * stride - 2 * padding + kW

    # TODO(synk): sub-pixel decomposition assumes kernel_size % stride == 0 and H_out/W_out
    # divisible by stride (true for the module's standard 4/2/1 config); other configs would
    # need per-parity tap-count padding and ragged output rows.
    assert kH % stride == 0 and kW % stride == 0
    assert H_out % stride == 0 and W_out % stride == 0
    Ho, Wo = H_out // stride, W_out // stride

    taps_h = _parity_taps(kH, stride, padding)
    taps_w = _parity_taps(kW, stride, padding)
    T_h, T_w = len(taps_h[0]), len(taps_w[0])

    dh = [d for tl in taps_h for _, d in tl]
    dw = [d for tl in taps_w for _, d in tl]
    plo_h, phi_h = max(0, -min(dh)), max(0, max(dh) + Ho - H)
    plo_w, phi_w = max(0, -min(dw)), max(0, max(dw) + Wo - W)
    x_p = jnp.pad(x, ((0, 0), (0, 0), (plo_h, phi_h), (plo_w, phi_w)))

    P = stride * stride
    K_sub = C_in * T_h * T_w
    M_sub = N * Ho * Wo

    patches, weights = [], []
    for r_h in range(stride):
        for r_w in range(stride):
            slabs = []
            for _, d_h in taps_h[r_h]:
                for _, d_w in taps_w[r_w]:
                    slabs.append(x_p[:, :, plo_h + d_h:plo_h + d_h + Ho,
                                     plo_w + d_w:plo_w + d_w + Wo])
            sl = jnp.stack(slabs, axis=0)               # (T_h*T_w, N, C_in, Ho, Wo)
            sl = jnp.transpose(sl, (2, 0, 1, 3, 4))     # (C_in, T, N, Ho, Wo)
            patches.append(sl.reshape(K_sub, M_sub))    # rows: (ci, th, tw); cols: (n, a, b)

            kh_idx = jnp.array([kh for kh, _ in taps_h[r_h]], dtype=jnp.int32)
            kw_idx = jnp.array([kw for kw, _ in taps_w[r_w]], dtype=jnp.int32)
            w_sub = weight[:, :, kh_idx, :][:, :, :, kw_idx]        # (C_in, C_out, T_h, T_w)
            weights.append(jnp.transpose(w_sub, (1, 0, 2, 3)).reshape(C_out, K_sub))

    patches_all = jnp.stack(patches, axis=0).astype(jnp.bfloat16)   # (P, K_sub, M_sub)
    w_all = jnp.stack(weights, axis=0).astype(jnp.bfloat16)         # (P, C_out, K_sub)
    g_col = gamma.reshape(C_out, 1).astype(jnp.float32)
    b_col = beta.reshape(C_out, 1).astype(jnp.float32)

    tm = _pick_tile(M_sub)
    m_tiles = M_sub // tm
    count = P * M_sub                                   # == N * H_out * W_out

    # Pass 1: per-parity conv matmul tiles (bf16) + per-parity partial BN statistics (f32).
    conv, s1p, s2p = pl.pallas_call(
        _conv_stats_kernel,
        out_shape=(jax.ShapeDtypeStruct((P, C_out, M_sub), jnp.bfloat16),
                   jax.ShapeDtypeStruct((P, C_out, 1), jnp.float32),
                   jax.ShapeDtypeStruct((P, C_out, 1), jnp.float32)),
        grid_spec=pltpu.PrefetchScalarGridSpec(
            num_scalar_prefetch=0,
            grid=(P, m_tiles),
            in_specs=[
                pl.BlockSpec((1, C_out, K_sub), lambda p, j: (p, 0, 0)),
                pl.BlockSpec((1, K_sub, tm), lambda p, j: (p, 0, j)),
            ],
            out_specs=(
                pl.BlockSpec((1, C_out, tm), lambda p, j: (p, 0, j)),
                pl.BlockSpec((1, C_out, 1), lambda p, j: (p, 0, 0)),
                pl.BlockSpec((1, C_out, 1), lambda p, j: (p, 0, 0)),
            )),
        compiler_params=pltpu.CompilerParams(
            dimension_semantics=("parallel", "arbitrary")),
    )(w_all, patches_all)

    # Combine partials and fold BatchNorm into one scale/shift per channel (C_out-sized, cheap).
    inv_n = 1.0 / float(count)
    mean = jnp.sum(s1p, axis=0) * inv_n                 # (C_out, 1)
    var = jnp.sum(s2p, axis=0) * inv_n - mean * mean    # biased variance, as training BatchNorm2d
    scale = g_col * lax.rsqrt(var + eps)
    shift = b_col - mean * scale

    # Pass 2: normalize + LeakyReLU (elementwise -> parallel over both grid axes).
    kernel2 = functools.partial(_bn_lrelu_kernel, slope=float(slope))
    col = pl.BlockSpec((C_out, 1), lambda p, j: (0, 0))
    y = pl.pallas_call(
        kernel2,
        out_shape=jax.ShapeDtypeStruct((P, C_out, M_sub), jnp.float32),
        grid_spec=pltpu.PrefetchScalarGridSpec(
            num_scalar_prefetch=0,
            grid=(P, m_tiles),
            in_specs=[
                pl.BlockSpec((1, C_out, tm), lambda p, j: (p, 0, j)),
                col, col,
            ],
            out_specs=pl.BlockSpec((1, C_out, tm), lambda p, j: (p, 0, j))),
        compiler_params=pltpu.CompilerParams(
            dimension_semantics=("parallel", "parallel")),
    )(conv, scale, shift)

    # Reassemble parities: (s, s, C_out, N, Ho, Wo) -> (N, C_out, H_out, W_out).
    y = y.reshape(stride, stride, C_out, N, Ho, Wo)
    y = jnp.transpose(y, (3, 2, 4, 0, 5, 1))
    return y.reshape(N, C_out, H_out, W_out)


# ---------------------------------- reference ---------------------------------- #

def _reference(x, weight, bias, gamma, beta, *, stride, padding, slope, eps):
    # Independent pure-JAX f32 reference (dilated conv path via lax), bias included.
    C_in, C_out, kH, kW = weight.shape
    w_conv = jnp.transpose(weight[:, :, ::-1, ::-1], (1, 0, 2, 3))  # (O, I, kh, kw)
    y = lax.conv_general_dilated(
        x, w_conv, window_strides=(1, 1),
        padding=[(kH - 1 - padding,) * 2, (kW - 1 - padding,) * 2],
        lhs_dilation=(stride, stride),
        dimension_numbers=("NCHW", "OIHW", "NCHW"),
    ) + bias[None, :, None, None]
    mean = jnp.mean(y, axis=(0, 2, 3), keepdims=True)
    var = jnp.mean((y - mean) ** 2, axis=(0, 2, 3), keepdims=True)
    yn = (y - mean) * lax.rsqrt(var + eps) * gamma[None, :, None, None] + beta[None, :, None, None]
    return jnp.where(yn >= 0, yn, slope * yn)


if __name__ == "__main__":
    # DeConvBlock(in_channels=4, out_channels=8, kernel_size=4, stride=2, padding=1)
    N, C_in, H, W = 2, 4, 16, 16
    C_out, kH, kW = 8, 4, 4
    stride, padding, slope, eps = 2, 1, 0.2, 1e-5

    key = jax.random.PRNGKey(0)
    kx, kw_, kb, kg, kbeta = jax.random.split(key, 5)
    x = jax.random.normal(kx, (N, C_in, H, W), dtype=jnp.float32)
    weight = jax.random.normal(kw_, (C_in, C_out, kH, kW), dtype=jnp.float32) * 0.1
    bias = jax.random.normal(kb, (C_out,), dtype=jnp.float32) * 0.1
    gamma = 1.0 + 0.1 * jax.random.normal(kg, (C_out,), dtype=jnp.float32)
    beta = 0.1 * jax.random.normal(kbeta, (C_out,), dtype=jnp.float32)

    out = deconv_block(x, weight, bias, gamma, beta,
                       stride=stride, padding=padding, slope=slope, eps=eps)
    out = jax.block_until_ready(out)

    ref = _reference(x, weight, bias, gamma, beta,
                     stride=stride, padding=padding, slope=slope, eps=eps)
    H_out = (H - 1) * stride - 2 * padding + kH
    W_out = (W - 1) * stride - 2 * padding + kW
    assert out.shape == (N, C_out, H_out, W_out)
    # bf16 MXU operands + bf16 intermediate activations vs a pure-f32 reference
    # -> tolerance covers bf16 rounding (~2^-8 relative) of the pre-BN activations.
    assert jnp.allclose(out, ref, atol=5e-2, rtol=5e-2), float(jnp.max(jnp.abs(out - ref)))

    print("KERNEL_OK")
</pallas_src>

<mosaic_0001>
module attributes {stable_mosaic.version = 11 : i64} {
  func.func @_conv_stats_kernel(%arg0: i32, %arg1: i32, %arg2: memref<1x8x16xbf16, #tpu.memory_space<vmem>>, %arg3: memref<1x16x512xbf16, #tpu.memory_space<vmem>>, %arg4: memref<1x8x512xbf16, #tpu.memory_space<vmem>>, %arg5: memref<1x8x1xf32, #tpu.memory_space<vmem>>, %arg6: memref<1x8x1xf32, #tpu.memory_space<vmem>>) attributes {dimension_semantics = [#tpu.dimension_semantics<parallel>, #tpu.dimension_semantics<arbitrary>], iteration_bounds = array<i64: 4, 1>, scalar_prefetch = 0 : i64, scratch_operands = 0 : i64, tpu.core_type = #tpu.core_type<tc>, window_params = [{transform_indices = @transform_0, window_bounds = array<i64: 1, 8, 16>}, {transform_indices = @transform_1, window_bounds = array<i64: 1, 16, 512>}, {transform_indices = @transform_2, window_bounds = array<i64: 1, 8, 512>}, {transform_indices = @transform_3, window_bounds = array<i64: 1, 8, 1>}, {transform_indices = @transform_4, window_bounds = array<i64: 1, 8, 1>}]} {
    %c0_i32 = arith.constant 0 : i32
    %0 = arith.cmpi eq, %arg1, %c0_i32 : i32
    %1 = arith.extui %0 : i1 to i32
    %c0_i32_0 = arith.constant 0 : i32
    %2 = arith.cmpi ne, %1, %c0_i32_0 : i32
    scf.if %2 {
      %cst_23 = arith.constant 0.000000e+00 : f32
      %29 = vector.broadcast %cst_23 : f32 to vector<1x8x1xf32>
      %c0_24 = arith.constant 0 : index
      %c0_25 = arith.constant 0 : index
      %c0_26 = arith.constant 0 : index
      %30 = vector.load %arg5[%c0_24, %c0_25, %c0_26] : memref<1x8x1xf32, #tpu.memory_space<vmem>>, vector<1x8x1xf32>
      tpu.vector_store %arg5[%c0_24, %c0_25, %c0_26], %29 {strides = array<i32>} : memref<1x8x1xf32, #tpu.memory_space<vmem>>, vector<1x8x1xf32>,
      %cst_27 = arith.constant 0.000000e+00 : f32
      %31 = vector.broadcast %cst_27 : f32 to vector<1x8x1xf32>
      %c0_28 = arith.constant 0 : index
      %c0_29 = arith.constant 0 : index
      %c0_30 = arith.constant 0 : index
      %32 = vector.load %arg6[%c0_28, %c0_29, %c0_30] : memref<1x8x1xf32, #tpu.memory_space<vmem>>, vector<1x8x1xf32>
      tpu.vector_store %arg6[%c0_28, %c0_29, %c0_30], %31 {strides = array<i32>} : memref<1x8x1xf32, #tpu.memory_space<vmem>>, vector<1x8x1xf32>,
    } else {
    }
    %c0 = arith.constant 0 : index
    %c0_1 = arith.constant 0 : index
    %c0_2 = arith.constant 0 : index
    %3 = vector.load %arg2[%c0, %c0_1, %c0_2] : memref<1x8x16xbf16, #tpu.memory_space<vmem>>, vector<1x8x16xbf16>
    %4 = vector.shape_cast %3 : vector<1x8x16xbf16> to vector<8x16xbf16>
    %c0_3 = arith.constant 0 : index
    %c0_4 = arith.constant 0 : index
    %c0_5 = arith.constant 0 : index
    %5 = vector.load %arg3[%c0_3, %c0_4, %c0_5] : memref<1x16x512xbf16, #tpu.memory_space<vmem>>, vector<1x16x512xbf16>
    %6 = vector.shape_cast %5 : vector<1x16x512xbf16> to vector<16x512xbf16>
    %cst = arith.constant dense<0.000000e+00> : vector<8x512xf32>
    %7 = tpu.matmul %4, %6, %cst {dimension_numbers = #tpu.dot_dimension_numbers<[1], [0], [0], [1], [0, 0, 1, 1], [], []>} : vector<8x16xbf16>, vector<16x512xbf16>, vector<8x512xf32> -> vector<8x512xf32>
    %8 = arith.truncf %7 : vector<8x512xf32> to vector<8x512xbf16>
    %c0_6 = arith.constant 0 : index
    %c0_7 = arith.constant 0 : index
    %c0_8 = arith.constant 0 : index
    %9 = vector.load %arg4[%c0_6, %c0_7, %c0_8] : memref<1x8x512xbf16, #tpu.memory_space<vmem>>, vector<1x8x512xbf16>
    %10 = vector.shape_cast %9 : vector<1x8x512xbf16> to vector<8x512xbf16>
    %11 = vector.shape_cast %8 : vector<8x512xbf16> to vector<1x8x512xbf16>
    tpu.vector_store %arg4[%c0_6, %c0_7, %c0_8], %11 {strides = array<i32>} : memref<1x8x512xbf16, #tpu.memory_space<vmem>>, vector<1x8x512xbf16>,
    %c0_9 = arith.constant 0 : index
    %c0_10 = arith.constant 0 : index
    %c0_11 = arith.constant 0 : index
    %12 = vector.load %arg5[%c0_9, %c0_10, %c0_11] : memref<1x8x1xf32, #tpu.memory_space<vmem>>, vector<1x8x1xf32>
    %13 = vector.shape_cast %12 : vector<1x8x1xf32> to vector<8x1xf32>
    %cst_12 = arith.constant dense<0.000000e+00> : vector<8xf32>
    %14 = vector.multi_reduction <add>, %7, %cst_12 [1] : vector<8x512xf32> to vector<8xf32>
    %15 = vector.shape_cast %14 : vector<8xf32> to vector<8x1xf32>
    %16 = arith.addf %13, %15 : vector<8x1xf32>
    %c0_13 = arith.constant 0 : index
    %c0_14 = arith.constant 0 : index
    %c0_15 = arith.constant 0 : index
    %17 = vector.load %arg5[%c0_13, %c0_14, %c0_15] : memref<1x8x1xf32, #tpu.memory_space<vmem>>, vector<1x8x1xf32>
    %18 = vector.shape_cast %17 : vector<1x8x1xf32> to vector<8x1xf32>
    %19 = vector.shape_cast %16 : vector<8x1xf32> to vector<1x8x1xf32>
    tpu.vector_store %arg5[%c0_13, %c0_14, %c0_15], %19 {strides = array<i32>} : memref<1x8x1xf32, #tpu.memory_space<vmem>>, vector<1x8x1xf32>,
    %c0_16 = arith.constant 0 : index
    %c0_17 = arith.constant 0 : index
    %c0_18 = arith.constant 0 : index
    %20 = vector.load %arg6[%c0_16, %c0_17, %c0_18] : memref<1x8x1xf32, #tpu.memory_space<vmem>>, vector<1x8x1xf32>
    %21 = vector.shape_cast %20 : vector<1x8x1xf32> to vector<8x1xf32>
    %22 = arith.mulf %7, %7 : vector<8x512xf32>
    %cst_19 = arith.constant dense<0.000000e+00> : vector<8xf32>
    %23 = vector.multi_reduction <add>, %22, %cst_19 [1] : vector<8x512xf32> to vector<8xf32>
    %24 = vector.shape_cast %23 : vector<8xf32> to vector<8x1xf32>
    %25 = arith.addf %21, %24 : vector<8x1xf32>
    %c0_20 = arith.constant 0 : index
    %c0_21 = arith.constant 0 : index
    %c0_22 = arith.constant 0 : index
    %26 = vector.load %arg6[%c0_20, %c0_21, %c0_22] : memref<1x8x1xf32, #tpu.memory_space<vmem>>, vector<1x8x1xf32>
    %27 = vector.shape_cast %26 : vector<1x8x1xf32> to vector<8x1xf32>
    %28 = vector.shape_cast %25 : vector<8x1xf32> to vector<1x8x1xf32>
    tpu.vector_store %arg6[%c0_20, %c0_21, %c0_22], %28 {strides = array<i32>} : memref<1x8x1xf32, #tpu.memory_space<vmem>>, vector<1x8x1xf32>,
    return
  }
  func.func @transform_0(%arg0: i32, %arg1: i32) -> (i32, i32, i32) {
    %c0_i32 = arith.constant 0 : i32
    %c0_i32_0 = arith.constant 0 : i32
    %c0_i32_1 = arith.constant 0 : i32
    return %arg0, %c0_i32, %c0_i32_0 : i32, i32, i32
  }
  func.func @transform_1(%arg0: i32, %arg1: i32) -> (i32, i32, i32) {
    %c0_i32 = arith.constant 0 : i32
    %c0_i32_0 = arith.constant 0 : i32
    return %arg0, %c0_i32, %arg1 : i32, i32, i32
  }
  func.func @transform_2(%arg0: i32, %arg1: i32) -> (i32, i32, i32) {
    %c0_i32 = arith.constant 0 : i32
    %c0_i32_0 = arith.constant 0 : i32
    return %arg0, %c0_i32, %arg1 : i32, i32, i32
  }
  func.func @transform_3(%arg0: i32, %arg1: i32) -> (i32, i32, i32) {
    %c0_i32 = arith.constant 0 : i32
    %c0_i32_0 = arith.constant 0 : i32
    %c0_i32_1 = arith.constant 0 : i32
    return %arg0, %c0_i32, %c0_i32_0 : i32, i32, i32
  }
  func.func @transform_4(%arg0: i32, %arg1: i32) -> (i32, i32, i32) {
    %c0_i32 = arith.constant 0 : i32
    %c0_i32_0 = arith.constant 0 : i32
    %c0_i32_1 = arith.constant 0 : i32
    return %arg0, %c0_i32, %c0_i32_0 : i32, i32, i32
  }
}

</mosaic_0001>

<bundles_post_ra>
// kernel: tpu_custom_call.1
= control target key start
LH: loop header
LB: loop body
LE: loop exit
PB: predicated region body
PF: predicated region fallthrough
CT: control target
= control target key end

     0   :  { %s1057_s0 = inlined_call_operand.hbm [shape: bf16[4,8,16], index: 0, kind: input, shape index: {}]   ;;  %s1058_s1 = inlined_call_operand.hbm [shape: bf16[4,16,512], index: 1, kind: input, shape index: {}]   ;;  %s1059_s2 = inlined_call_operand.hbm [shape: bf16[4,8,512], index: 2, kind: output, shape index: {0}]   ;;  %s1060_s3 = inlined_call_operand.vmem [shape: f32[4,8,1], index: 3, kind: output, shape index: {1}]   ;;  %s1061_s4 = inlined_call_operand.vmem [shape: f32[4,8,1], index: 4, kind: output, shape index: {2}]  }
   0x1   :  { %1062 = sst [smem:[#allocation11_spill]] %s1057_s0 }
   0x2   :  { %10 = vsyncpa [#allocation3], 0 }
   0x3   :  { %12 = vsyncpa [#allocation3 + $0x1], 0 }
   0x4   :  { %13 = vsyncpa [#allocation6], 0 }
   0x5   :  { %15 = vsyncpa [#allocation6 + $0x1], 0 }
   0x6   :  { %16 = vsyncpa [#allocation4], 0 }
   0x7   :  { %18 = vsyncpa [#allocation4 + $0x1], 0  ;;  %s892_s15 = smov 0   ;;  %s894_s16 = smov 0  }
   0x8   :  { %s896_s17 = smov 0   ;;  %s898_s18 = smov 0  }
   0x9   :  { %s900_s19 = smov 0   ;;  %s902_s20 = smov 0  }
   0xa LB: > { %s600_s21 = sadd.s32 4294967295, %s862_s20   ;;  %s601_s22 = sadd.s32 4294967294, %s862_s20   ;;  %s862_s20 = sphi %s902_s20, %s24_s20   ;;  %s858_s19 = sphi %s900_s19, %s1073_s19   ;;  %s854_s18 = sphi %s898_s18, %s1072_s18   ;;  %s850_s17 = sphi %s896_s17, %s1071_s17   ;;  %s846_s16 = sphi %s894_s16, %s1070_s16   ;;  %s842_s15 = sphi %s892_s15, %s1069_s15  }
   0xb   : > { %s36_s23 = sadd.s32 1, %s858_s19  ;;  %s43_s24 = sadd.s32 1, %s850_s17 }
   0xc   : > { %p38_p0 = scmp.ge.s32.totalorder %s36_s23, 4  ;;  %p50_p1 = scmp.ne.s32.totalorder %s850_s17, %s846_s16 }
   0xd   : > { %p51_p2 = scmp.eq.s32.totalorder %s862_s20, 0  ;;  %p56_p3 = scmp.ne.s32.totalorder %s846_s16, %s842_s15 }
   0xe   : > { %s1075_s23 = smov (%p38_p0, %s36_s23), 0  ;;  %p57_p5 = scmp.eq.s32.totalorder %s600_s21, 0 }
   0xf   : > { %p933_p4 = por %p51_p2, %p50_p1  ;;  %s40_s26 = ssub.s32 %s858_s19, %s1075_s23 }
  0x10   : > { %p110_p6 = scmp.eq.s32.totalorder %s600_s21, 3  ;;  %p41_p7 = scmp.eq.s32.totalorder %s40_s26, 0 }
  0x11   : > { %p939_p8 = por %p57_p5, %p56_p3  ;;  %p116_p10 = scmp.eq.s32.totalorder %s601_s22, 3 }
  0x12   : > { %p943_p9 = por %p110_p6, %p50_p1  ;;  %p663_p12 = scmp.lt.s32.totalorder %s862_s20, 4 }
  0x13   : > { %s948_s29 = scalar_select %p41_p7, %s850_s17, %s43_s24  }
  0x14   : > { %p950_p11 = por %p116_p10, %p56_p3  ;;  %s956_s5 = sand.u32 1, %s850_s17  }
  0x15   : > { %s604_s6 = sshll.u32 %s956_s5, 2  ;;  %s605_s7 = sshll.u32 %s858_s19, 2 }
  0x16   : > { %s1067_s0 = sld [smem:[#allocation11_spill]]  ;;  %s192_s11 = scalar_lea.vmem [#allocation2], %s604_s6 }
  0x17   : > { %s200_s12 = sshll.u32 %s192_s11, 4  ;;  %p965_p13 = pnand %p663_p12, %p933_p4  ;;  %s201_s12 = int_to_ptr.vmem [resolvable:$true] %s200_s12 }
  0x18   : > { %p609_p0 = scmp.ge.s32.totalorder %s862_s20, 1  ;;  %p229_p1 = scmp.lt.s32.totalorder %s862_s20, 5 }
  0x19   : > { %s189_s21 = scalar_lea.sflag [#allocation3], %s956_s5  ;;  %s606_s22 = sshll.u32 %s956_s5, 5 }
  0x1a   : > { %p230_p2 = pnand %p609_p0, %p229_p1  ;;  %s640_s24 = sshll.u32 %s858_s19, 5 }
  0x1b   : > { %s211_s8 = scalar_lea.vmem [#allocation5], %s606_s22  ;;  %s864_s11 = smov 256  }
  0x1c   : > { %s196_s10 = scalar_lea.hbm %s1067_s0, %s605_s7  ;;  %s218_s7 = scalar_lea.hbm %s1058_s1, %s640_s24 }
  0x1d   : > { %s198_s13 = sshll.u32 %s196_s10, 4  ;;  %s221_s25 = sshll.u32 %s211_s8, 4  ;;  %s199_s13 = int_to_ptr.hbm [resolvable:$true] %s198_s13  ;;  %s222_s25 = int_to_ptr.vmem [resolvable:$true] %s221_s25 }
  0x1e   : > { %655 = dma.hbm_to_vmem [thread:$0]  (!%p965_p13), %s199_s13, 64, %s201_s12, %s189_s21  }
  0x1f   : > { %s219_s9 = sshll.u32 %s218_s7, 4  ;;  %s208_s10 = scalar_lea.sflag [#allocation6], %s956_s5  ;;  %s220_s9 = int_to_ptr.hbm [resolvable:$true] %s219_s9 }
  0x20   : > { %s865_s0 = smov 16   ;;  %233 = sbr.rel (%p230_p2) target bundleno = 312 (0x138), region = 28 }
  0x21   : > { %658 = dma.hbm_to_vmem [thread:$0]  (!%p965_p13), %s220_s9, 512, %s222_s25, %s208_s10, %s864_s11, %s864_s11, %s865_s0  }
  0x22   : > { %s983_s12 = sand.u32 (!%p230_p2), 1, %s846_s16  }
  0x23   : > { %s610_s13 = sshll.u32 (!%p230_p2), %s983_s12, 2  ;;  %s236_s21 = scalar_lea.sflag (!%p230_p2), [#allocation3], %s983_s12 }
  0x24   : > { %s239_s24 = scalar_lea.vmem (!%p230_p2), [#allocation2], %s610_s13 }
  0x25   : > { %829 = dma.done.wait (%p939_p8), %s236_s21, 64  }
  0x26   : > { %831 = vsyncadd (%p939_p8), %s236_s21, 4294967232  ;;  %s611_s5 = sshll.u32 %s983_s12, 5  ;;  %s246_s0 = scalar_lea.sflag [#allocation6], %s983_s12 }
  0x27   : > { %s249_s14 = scalar_lea.vmem [#allocation5], %s611_s5 }
  0x28   : > { %833 = dma.done.wait (%p939_p8), %s246_s0, 512  }
  0x29   : > { %835 = vsyncadd (%p939_p8), %s246_s0, 4294966784  ;;  %v617_v0 = vld [vmem:[%s249_s14] sm:$0xf]  ;;  %v643_v1 = vld [vmem:[%s249_s14 + $0xc] sm:$0xf0]  ;;  %vm331_vm0 = vcmask 130048  }
  0x2a   : > { %v641_v2 = vld [vmem:[%s249_s14 + $0x4] sm:$0xf]  ;;  %v618_v3 = vor.u32 %v643_v1, %v617_v0  ;;  %v619_v4 = vld [vmem:[%s249_s14 + $0x10] sm:$0xf0]  ;;  %v625_v5 = vld [vmem:[%s249_s14 + $0x8] sm:$0xf] }
  0x2b   : > { %v644_v6 = vld [vmem:[%s249_s14 + $0x14] sm:$0xf0]  ;;  %v622_v7 = vor.u32 %v641_v2, %v619_v4  ;;  %v642_v9 = vld [vmem:[%s249_s14 + $0xc] sm:$0xf]  ;;  %v627_v10 = vld [vmem:[%s249_s14 + $0x18] sm:$0xf0] }
  0x2c   : > { %v626_v8 = vor.u32 %v644_v6, %v625_v5  ;;  %342 = vmatpush.bf16.msra.mxu0 %v618_v3  ;;  %v630_v11 = vor.u32 %v642_v9, %v627_v10  ;;  %v306_v12 = vld [vmem:[%s239_s24] sm:$0xf]  ;;  %p290_p3 = scmp.lt.s32.totalorder %s854_s18, 3  ;;  %vm303_vm1 = vcmask 7168   ;;  %v866_v13 = vmov 0.0   ;;  %s612_s8 = sshll.u32 %s983_s12, 4 }
  0x2d   : > { %355 = vmatpush.bf16.msra.mxu1 %v622_v7  ;;  %s275_s11 = scalar_lea.vmem [#allocation7], %s612_s8  ;;  %s645_s13 = sshll.u32 %s854_s18, 4 }
  0x2e   : > { %368 = vmatpush.bf16.msra.mxu2 %v626_v8  ;;  %381 = vmatpush.bf16.msra.mxu3 %v630_v11  ;;  %s291_s27 = scalar_select %p290_p3, %s854_s18, 3 }
  0x2f   : > { %631 = vmatmul.msk.bf16.vlgmr.msra.gmra.mxu0 %vm331_vm0, %v306_v12  ;;  %s434_s5 = scalar_lea.hbm %s1059_s2, %s645_s13  ;;  %s436_s0 = sshll.u32 %s275_s11, 4  ;;  %s437_s0 = int_to_ptr.vmem [resolvable:$true] %s436_s0 }
  0x30   : > { %632 = vmatmul.msk.bf16.vlgmr.msra.gmra.mxu1 %vm331_vm0, %v306_v12  ;;  %s613_s22 = sshll.u32 %s291_s27, 3  ;;  %s438_s14 = sshll.u32 %s434_s5, 4  ;;  %s439_s14 = int_to_ptr.hbm [resolvable:$true] %s438_s14 }
  0x31   : > { %633 = vmatmul.msk.bf16.vlgmr.msra.gmra.mxu2 %vm331_vm0, %v306_v12  ;;  %634 = vmatmul.msk.bf16.vlgmr.msra.gmra.mxu3 %vm331_vm0, %v306_v12  ;;  %s1002_s7 = scalar_lea.vmem %s1060_s3, %s613_s22  ;;  %s1010_s10 = scalar_lea.vmem %s1061_s4, %s613_s22 }
  0x32   : > { %304 = vst.msk [vmem:[%s1002_s7] sm:$0xff] %vm303_vm1, %v866_v13  ;;  %s413_s18 = scalar_lea.sflag [#allocation4], %s983_s12  ;;  %s790_s27 = sshra.s32 %s439_s14, 4  ;;  %s791_s27 = int_to_ptr.hbm [resolvable:$true] %s790_s27 }
  0x33   : > { %305 = vst.msk [vmem:[%s1010_s10] sm:$0xff] %vm303_vm1, %v866_v13  ;;  %s792_s22 = scalar_lea.hbm %s791_s27, 16  ;;  %s796_s8 = scalar_lea.hbm %s1059_s2, 64 }
  0x34   : > { %p793_p4 = scmp.ne.s32.totalorder %s791_s27, %s792_s22  ;;  %p797_p7 = scmp.lt.s32.totalorder %s791_s27, %s1059_s2 }
  0x35   : > { %p798_p8 = scmp.lt.s32.totalorder %s796_s8, %s792_s22 }
  0x36   : > { %p794_p5 = pnand %p793_p4, %p943_p9 }
  0x37   : > { %p799_p10 = por %p798_p8, %p797_p7 }
  0x38   : > { %p795_p6 = pneg %p794_p5 }
  0x3a   : > { %p800_p12 = pnand %p799_p10, %p795_p6 }
  0xac   : > { %v344_v14 = vpop.f32.mrf.mxu0 }
  0xad   : > { %v357_v15 = vpop.f32.mrf.mxu1  ;;  %v401_v18 = vmul.f32 %v344_v14, %v344_v14 }
  0xae   : > { %v387_v16 = vpack.c.bf16 %v357_v15, %v344_v14  ;;  %v392_v17 = vadd.f32 %v357_v15, %v344_v14  ;;  %v402_v19 = vmul.f32 %v357_v15, %v357_v15 }
  0xb0   : > { %389 = vst [vmem:[%s275_s11] sm:$0xff] %v387_v16  ;;  %v405_v28 = vadd.f32 %v402_v19, %v401_v18 }
  0xb4   : > { %v370_v20 = vpop.f32.mrf.mxu2  ;;  %v383_v21 = vpop.f32.mrf.mxu3 }
  0xb5   : > { %v346_v22 = vpop.f32.mrf.mxu0  ;;  %v393_v23 = vadd.f32 %v392_v17, %v370_v20  ;;  %v388_v24 = vpack.c.bf16 %v383_v21, %v370_v20  ;;  %v359_v25 = vpop.f32.mrf.mxu1  ;;  %v403_v26 = vmul.f32 %v370_v20, %v370_v20 }
  0xb7   : > { %v394_v27 = vadd.f32 %v393_v23, %v383_v21  ;;  %390 = vst [vmem:[%s275_s11 + $0x8] sm:$0xff] %v388_v24 }
  0xb9   : > { %395 = vadd.xlane.f32.xlu0 %v394_v27 }
  0xba   : > { %803 = shalt.err (!%p800_p12)
}
  0xbb   : > { %650 = dma.vmem_to_hbm [thread:$0]  (%p943_p9), %s437_s0, 256, %s439_s14, %s413_s18   ;;  %v404_v29 = vmul.f32 %v383_v21, %v383_v21  ;;  %v406_v30 = vadd.f32 %v405_v28, %v403_v26  ;;  %v391_v34 = vld [vmem:[%s1002_s7] sm:$0xff] }
  0xbc   : > { %v372_v31 = vpop.f32.mrf.mxu2  ;;  %v385_v32 = vpop.f32.mrf.mxu3  ;;  %v400_v37 = vld [vmem:[%s1010_s10] sm:$0xff] }
  0xbd   : > { %v407_v33 = vadd.f32 %v406_v30, %v404_v29 }
  0xc1   : > { %408 = vadd.xlane.f32.xlu0 %v407_v33 }
 0x12c   : > { %v396_v35 = vpop.xlane.xlu0 %395 }
 0x12d   : > { %v397_v36 = vadd.f32 %v396_v35, %v391_v34 }
 0x12f   : > { %399 = vst.msk [vmem:[%s1002_s7] sm:$0xff] %vm303_vm1, %v397_v36 }
 0x134   : > { %v409_v38 = vpop.xlane.xlu0 %408 }
 0x135   : > { %v410_v39 = vadd.f32 %v409_v38, %v400_v37 }
 0x137   : > { %411 = vst.msk [vmem:[%s1010_s10] sm:$0xff] %vm303_vm1, %v410_v39 }
 0x138 PF: > { %p664_p9 = scmp.ge.s32.totalorder %s862_s20, 2  ;;  %s456_s28 = sand.u32 1, %s842_s15  }
 0x139   : > { %s457_s12 = scalar_lea.sflag [#allocation4], %s456_s28 }
 0x13a   : > { %p660_p13 = pnand %p664_p9, %p950_p11 }
 0x13c   : > { %p661_p0 = pneg %p660_p13 }
 0x13e   : > { %837 = dma.done.wait (%p661_p0), %s457_s12, 256  }
 0x13f   : > { %839 = vsyncadd (%p661_p0), %s457_s12, 4294967040  ;;  %s24_s20 = sadd.s32 1, %s862_s20   ;;  %s1069_s15 = smov %s846_s16 }
 0x140   : > { %p21_p1 = scmp.ge.s32.totalorder %s24_s20, 6   ;;  %s1070_s16 = smov %s850_s17 }
 0x141   : > { %s1071_s17 = smov %s948_s29  ;;  %s1072_s18 = smov %s858_s19 }
 0x142   : > { %s1073_s19 = smov %s1075_s23  ;;  %23 = sbr.rel (!%p21_p1) target bundleno = 10 (0xa), region = 114 }
 0x147   :  { %477 = vsyncpa [#allocation3], 1 }
 0x148   :  { %479 = vsyncpa [#allocation3 + $0x1], 1 }
 0x149   :  { %480 = vsyncpa [#allocation6], 1 }
 0x14a   :  { %482 = vsyncpa [#allocation6 + $0x1], 1 }
 0x14b   :  { %483 = vsyncpa [#allocation4], 1 }
 0x14c   :  { %485 = vsyncpa [#allocation4 + $0x1], 1 }

</bundles_post_ra>
